<compile_context>
chip_gen: v7x
topology: tpu7x:2x2x1
jax: 0.10.0
libtpu: 0.0.40
codegen_flags: <defaults>
</compile_context>

<pallas_src>
import functools

import jax
import jax.numpy as jnp
from jax.experimental import pallas as pl
from jax.experimental.pallas import tpu as pltpu


def _finalize(y, b_ref, g_ref, bb_ref, o_ref, *, use_batch_norm: bool,
              use_layer_norm: bool, true_out_dim: int):
    """bias add + optional BatchNorm1d (batch stats) + optional LayerNorm
    (no affine) + ReLU, then store to the output tile."""
    y = y + b_ref[...].astype(jnp.float32)                 # (bm, bn)

    if use_batch_norm:
        # torch.nn.BatchNorm1d training forward: biased batch stats, eps=1e-3.
        # Per-column stats (full batch is resident: bm == B on this path).
        mean = jnp.mean(y, axis=0, keepdims=True)
        var = jnp.mean((y - mean) ** 2, axis=0, keepdims=True)
        y = (y - mean) * jax.lax.rsqrt(var + 1e-3)
        y = y * g_ref[...].astype(jnp.float32) + bb_ref[...].astype(jnp.float32)

    if use_layer_norm:
        # torch.nn.LayerNorm(elementwise_affine=False), eps=1e-5, over last dim.
        # Block holds the full (possibly zero-padded) out_dim; mask pad columns
        # out of the statistics.
        n_cols = y.shape[-1]
        if n_cols != true_out_dim:
            col = jax.lax.broadcasted_iota(jnp.int32, (1, n_cols), 1)
            mask = col < true_out_dim
            mean = jnp.sum(jnp.where(mask, y, 0.0), axis=-1,
                           keepdims=True) / true_out_dim
            d = jnp.where(mask, y - mean, 0.0)
            var = jnp.sum(d * d, axis=-1, keepdims=True) / true_out_dim
        else:
            mean = jnp.mean(y, axis=-1, keepdims=True)
            var = jnp.mean((y - mean) ** 2, axis=-1, keepdims=True)
        y = (y - mean) * jax.lax.rsqrt(var + 1e-5)

    # Activation: ReLU (module default).
    y = jnp.maximum(y, 0.0)
    o_ref[...] = y.astype(o_ref.dtype)


def _fc_kernel(*refs, use_batch_norm: bool, use_layer_norm: bool,
               true_out_dim: int, single_k: bool):
    if single_k:
        acc_ref = None
        rest = refs
    else:
        *rest, acc_ref = refs
    if use_batch_norm:
        x_ref, w_ref, b_ref, g_ref, bb_ref, o_ref = rest
    else:
        x_ref, w_ref, b_ref, o_ref = rest
        g_ref = bb_ref = None

    # Linear — MXU matmul in native dtype, f32 accumulation.
    part = jnp.dot(x_ref[...], w_ref[...], preferred_element_type=jnp.float32)

    if single_k:
        _finalize(part, b_ref, g_ref, bb_ref, o_ref,
                  use_batch_norm=use_batch_norm, use_layer_norm=use_layer_norm,
                  true_out_dim=true_out_dim)
    else:
        k = pl.program_id(2)

        @pl.when(k == 0)
        def _():
            acc_ref[...] = jnp.zeros_like(acc_ref)

        acc_ref[...] += part

        @pl.when(k == pl.num_programs(2) - 1)
        def _():
            _finalize(acc_ref[...], b_ref, g_ref, bb_ref, o_ref,
                      use_batch_norm=use_batch_norm,
                      use_layer_norm=use_layer_norm,
                      true_out_dim=true_out_dim)


def fully_connected_forward(x, w, b, bn_gamma=None, bn_beta=None, *,
                            use_batch_norm: bool = False,
                            use_layer_norm: bool = False,
                            block_batch: int | None = None,
                            block_n: int | None = None,
                            block_k: int | None = None):
    """Pallas-call wrapper.

    x:        (B, in_dim)
    w:        (in_dim, out_dim)   (torch Linear weight transposed)
    b:        (out_dim,)
    bn_gamma: (out_dim,) BatchNorm1d weight (only used if use_batch_norm)
    bn_beta:  (out_dim,) BatchNorm1d bias   (only used if use_batch_norm)
    """
    B, in_dim = x.shape
    out_dim = w.shape[1]

    # ---- lane-dense output: pad out_dim to a multiple of 128 ---------------
    out_pad = ((out_dim + 127) // 128) * 128
    if out_pad != out_dim:
        pad = out_pad - out_dim
        w = jnp.pad(w, ((0, 0), (0, pad)))
        b = jnp.pad(b, (0, pad))
        if use_batch_norm:
            bn_gamma = jnp.pad(bn_gamma, (0, pad), constant_values=1.0)
            bn_beta = jnp.pad(bn_beta, (0, pad))

    # ---- batch tiling -------------------------------------------------------
    if use_batch_norm:
        # Training-mode BN needs the full batch for its column statistics.
        bm = B
    else:
        if block_batch is None:
            bm = 1024 if x.dtype in (jnp.bfloat16, jnp.float16) else 512
        else:
            bm = block_batch
        bm = min(bm, B)
        if bm < B:
            bm = max(8, (bm // 8) * 8)       # keep sublane alignment

    # ---- out_dim tiling -----------------------------------------------------
    if use_layer_norm:
        bn = out_pad                         # LayerNorm reduces over the full row
    elif block_n is not None:
        bn = min(((block_n + 127) // 128) * 128, out_pad)
    else:
        bn = 256 if out_pad % 256 == 0 else 128
    if out_pad % bn != 0:
        bn = 128                             # 128 always divides out_pad

    # ---- contraction (in_dim) tiling ---------------------------------------
    if block_k is None:
        bk = in_dim if in_dim <= 2048 else 512
    else:
        bk = block_k
    if bk >= in_dim:
        single_k = True
        bk = in_dim
        k_pad = in_dim
    else:
        single_k = False
        bk = max(128, (bk // 128) * 128)     # lane-aligned K tiles
        k_pad = pl.cdiv(in_dim, bk) * bk
        if k_pad != in_dim:                  # zero-pad: contributes nothing to y
            kp = k_pad - in_dim
            x = jnp.pad(x, ((0, 0), (0, kp)))
            w = jnp.pad(w, ((0, kp), (0, 0)))

    num_b = pl.cdiv(B, bm)
    num_n = out_pad // bn
    num_k = k_pad // bk

    kernel = functools.partial(_fc_kernel,
                               use_batch_norm=use_batch_norm,
                               use_layer_norm=use_layer_norm,
                               true_out_dim=out_dim,
                               single_k=single_k)

    b2 = b.reshape(1, out_pad)
    args = [x, w, b2]
    if use_batch_norm:
        args += [bn_gamma.reshape(1, out_pad), bn_beta.reshape(1, out_pad)]

    if single_k:
        grid = (num_n, num_b)
        x_spec = pl.BlockSpec((bm, bk), lambda j, i: (i, 0))
        w_spec = pl.BlockSpec((bk, bn), lambda j, i: (0, j))
        v_spec = pl.BlockSpec((1, bn), lambda j, i: (0, j))
        o_spec = pl.BlockSpec((bm, bn), lambda j, i: (i, j))
        semantics = ("parallel", "parallel")
        scratch = []
    else:
        grid = (num_n, num_b, num_k)          # reduction axis innermost
        x_spec = pl.BlockSpec((bm, bk), lambda j, i, k: (i, k))
        w_spec = pl.BlockSpec((bk, bn), lambda j, i, k: (k, j))
        v_spec = pl.BlockSpec((1, bn), lambda j, i, k: (0, j))
        o_spec = pl.BlockSpec((bm, bn), lambda j, i, k: (i, j))
        semantics = ("parallel", "parallel", "arbitrary")
        scratch = [pltpu.VMEM((bm, bn), jnp.float32)]

    in_specs = [x_spec, w_spec, v_spec]
    if use_batch_norm:
        in_specs += [v_spec, v_spec]

    out = pl.pallas_call(
        kernel,
        out_shape=jax.ShapeDtypeStruct((B, out_pad), x.dtype),
        grid=grid,
        in_specs=in_specs,
        out_specs=o_spec,
        scratch_shapes=scratch,
        compiler_params=pltpu.CompilerParams(
            dimension_semantics=semantics,
            vmem_limit_bytes=48 * 1024 * 1024),
    )(*args)

    if out_pad != out_dim:
        out = out[:, :out_dim]
    return out


def _reference(x, w, b, bn_gamma, bn_beta, *, use_batch_norm, use_layer_norm):
    """Pure-JAX reference mirroring the PyTorch forward (fp32)."""
    y = x.astype(jnp.float32) @ w.astype(jnp.float32) + b.astype(jnp.float32)
    if use_batch_norm:
        mean = jnp.mean(y, axis=0, keepdims=True)
        var = jnp.mean((y - mean) ** 2, axis=0, keepdims=True)
        y = (y - mean) / jnp.sqrt(var + 1e-3) * bn_gamma + bn_beta
    if use_layer_norm:
        mean = jnp.mean(y, axis=-1, keepdims=True)
        var = jnp.mean((y - mean) ** 2, axis=-1, keepdims=True)
        y = (y - mean) / jnp.sqrt(var + 1e-5)
    return jnp.maximum(y, 0.0)


def _make_params(key, in_dim, out_dim):
    kw, kb = jax.random.split(key)
    limit = 1.0 / (in_dim ** 0.5)            # torch.nn.Linear default init
    w = jax.random.uniform(kw, (in_dim, out_dim), jnp.float32, -limit, limit)
    b = jax.random.uniform(kb, (out_dim,), jnp.float32, -limit, limit)
    g = jnp.ones((out_dim,), jnp.float32)     # BatchNorm1d default weight
    bb = jnp.zeros((out_dim,), jnp.float32)   # BatchNorm1d default bias
    return w, b, g, bb


if __name__ == "__main__":
    key = jax.random.PRNGKey(0)
    k0, k1, k2, k3 = jax.random.split(key, 4)

    ok = True

    # ---- Config A: small shapes (batch=16, input_dim=32, output_dim=16) ----
    B, IN_DIM, OUT_DIM = 16, 32, 16
    w, b, g, bb = _make_params(k0, IN_DIM, OUT_DIM)
    x = jax.random.normal(k1, (B, IN_DIM), jnp.float32)
    for use_bn, use_ln in [(False, False), (True, False), (False, True), (True, True)]:
        ref = _reference(x, w, b, g, bb, use_batch_norm=use_bn, use_layer_norm=use_ln)
        # Default tiling path (single K block).
        out = fully_connected_forward(x, w, b, g, bb,
                                      use_batch_norm=use_bn, use_layer_norm=use_ln)
        out = jax.block_until_ready(out)
        ok &= bool(jnp.allclose(out, ref, atol=1e-4, rtol=1e-4))
        # Small batch tile to exercise the multi-step pipelined grid.
        out2 = fully_connected_forward(x, w, b, g, bb,
                                       use_batch_norm=use_bn, use_layer_norm=use_ln,
                                       block_batch=8)
        out2 = jax.block_until_ready(out2)
        ok &= bool(jnp.allclose(out2, ref, atol=1e-4, rtol=1e-4))

    # ---- Config B: wider input to exercise the K-tiled accumulator path ----
    B2, IN_DIM2, OUT_DIM2 = 16, 256, 16
    w2, b2_, g2, bb2 = _make_params(k2, IN_DIM2, OUT_DIM2)
    x2 = jax.random.normal(k3, (B2, IN_DIM2), jnp.float32)
    for use_bn, use_ln in [(False, False), (True, False), (False, True), (True, True)]:
        ref = _reference(x2, w2, b2_, g2, bb2,
                         use_batch_norm=use_bn, use_layer_norm=use_ln)
        out = fully_connected_forward(x2, w2, b2_, g2, bb2,
                                      use_batch_norm=use_bn, use_layer_norm=use_ln,
                                      block_k=128)        # num_k = 2
        out = jax.block_until_ready(out)
        ok &= bool(jnp.allclose(out, ref, atol=1e-4, rtol=1e-4))

    if ok:
        print("KERNEL_OK")
    else:
        print("KERNEL_MISMATCH")
</pallas_src>

<mosaic_0001>
module attributes {stable_mosaic.version = 11 : i64} {
  func.func @_fc_kernel(%arg0: i32, %arg1: i32, %arg2: memref<16x32xf32, #tpu.memory_space<vmem>>, %arg3: memref<32x128xf32, #tpu.memory_space<vmem>>, %arg4: memref<1x128xf32, #tpu.memory_space<vmem>>, %arg5: memref<16x128xf32, #tpu.memory_space<vmem>>) attributes {dimension_semantics = [#tpu.dimension_semantics<parallel>, #tpu.dimension_semantics<parallel>], iteration_bounds = array<i64: 1, 1>, scalar_prefetch = 0 : i64, scratch_operands = 0 : i64, tpu.core_type = #tpu.core_type<tc>, window_params = [{transform_indices = @transform_0, window_bounds = array<i64: 16, 32>}, {transform_indices = @transform_1, window_bounds = array<i64: 32, 128>}, {transform_indices = @transform_2, window_bounds = array<i64: 1, 128>}, {transform_indices = @transform_3, window_bounds = array<i64: 16, 128>}]} {
    %c0 = arith.constant 0 : index
    %c0_0 = arith.constant 0 : index
    %0 = vector.load %arg2[%c0, %c0_0] : memref<16x32xf32, #tpu.memory_space<vmem>>, vector<16x32xf32>
    %c0_1 = arith.constant 0 : index
    %c0_2 = arith.constant 0 : index
    %1 = vector.load %arg3[%c0_1, %c0_2] : memref<32x128xf32, #tpu.memory_space<vmem>>, vector<32x128xf32>
    %cst = arith.constant dense<0.000000e+00> : vector<16x128xf32>
    %2 = tpu.matmul %0, %1, %cst {dimension_numbers = #tpu.dot_dimension_numbers<[1], [0], [0], [1], [0, 0, 1, 1], [], []>} : vector<16x32xf32>, vector<32x128xf32>, vector<16x128xf32> -> vector<16x128xf32>
    %c0_3 = arith.constant 0 : index
    %c0_4 = arith.constant 0 : index
    %3 = vector.load %arg4[%c0_3, %c0_4] : memref<1x128xf32, #tpu.memory_space<vmem>>, vector<1x128xf32>
    %4 = vector.broadcast %3 : vector<1x128xf32> to vector<16x128xf32>
    %5 = arith.addf %2, %4 : vector<16x128xf32>
    %cst_5 = arith.constant 0.000000e+00 : f32
    %6 = vector.broadcast %cst_5 : f32 to vector<16x128xf32>
    %7 = arith.maximumf %5, %6 : vector<16x128xf32>
    %c0_6 = arith.constant 0 : index
    %c0_7 = arith.constant 0 : index
    %8 = vector.load %arg5[%c0_6, %c0_7] : memref<16x128xf32, #tpu.memory_space<vmem>>, vector<16x128xf32>
    tpu.vector_store %arg5[%c0_6, %c0_7], %7 {strides = array<i32>} : memref<16x128xf32, #tpu.memory_space<vmem>>, vector<16x128xf32>,
    return
  }
  func.func @transform_0(%arg0: i32, %arg1: i32) -> (i32, i32) {
    %c0_i32 = arith.constant 0 : i32
    %c0_i32_0 = arith.constant 0 : i32
    return %arg1, %c0_i32 : i32, i32
  }
  func.func @transform_1(%arg0: i32, %arg1: i32) -> (i32, i32) {
    %c0_i32 = arith.constant 0 : i32
    %c0_i32_0 = arith.constant 0 : i32
    return %c0_i32, %arg0 : i32, i32
  }
  func.func @transform_2(%arg0: i32, %arg1: i32) -> (i32, i32) {
    %c0_i32 = arith.constant 0 : i32
    %c0_i32_0 = arith.constant 0 : i32
    return %c0_i32, %arg0 : i32, i32
  }
  func.func @transform_3(%arg0: i32, %arg1: i32) -> (i32, i32) {
    %c0_i32 = arith.constant 0 : i32
    return %arg1, %arg0 : i32, i32
  }
}

</mosaic_0001>

<bundles_post_ra>
// kernel: tpu_custom_call.1
= control target key start
LH: loop header
LB: loop body
LE: loop exit
PB: predicated region body
PF: predicated region fallthrough
CT: control target
= control target key end

     0   :  { %8 = vsyncpa [#allocation3], 0  ;;  %s338_s0 = inlined_call_operand.hbm [shape: f32[16,32], index: 0, kind: input, shape index: {}]   ;;  %s339_s1 = inlined_call_operand.hbm [shape: f32[32,128], index: 1, kind: input, shape index: {}]   ;;  %s340_s2 = inlined_call_operand.vmem [shape: f32[1,128], index: 2, kind: input, shape index: {}]   ;;  %s341_s3 = inlined_call_operand.hbm [shape: f32[16,128], index: 3, kind: output, shape index: {}]  }
   0x1   :  { %9 = vsyncpa [#allocation6], 0 }
   0x2   :  { %10 = vsyncpa [#allocation4], 0  ;;  %s265_s12 = smov [#allocation2]   ;;  %s193_s16 = scalar_lea.hbm %s338_s0, 256 }
   0x3   :  { %s16_s13 = sshll.u32 %s265_s12, 4  ;;  %p194_p0 = scmp.ne.s32.totalorder %s338_s0, %s193_s16  ;;  %s17_s13 = int_to_ptr.vmem [resolvable:$true] %s16_s13 }
   0x4   :  { %p197_p1 = scmp.lt.u32.totalorder %s193_s16, %s338_s0 }
   0x6   :  { %p199_p2 = pnand %p197_p1, %p194_p0 }
   0x8   :  { %202 = shalt.err (!%p199_p2)
}
   0x9   :  { %s203_s21 = scalar_lea.vmem %s17_s13, 256  ;;  %p208_p4 = scmp.lt.s32.totalorder %s17_s13, %s17_s13 }
   0xa   :  { %p204_p3 = scmp.ne.s32.totalorder %s17_s13, %s203_s21  ;;  %p209_p5 = scmp.lt.s32.totalorder %s203_s21, %s203_s21 }
   0xc   :  { %p210_p6 = por %p209_p5, %p208_p4 }
   0xe   :  { %p211_p7 = pnand %p210_p6, %p204_p3 }
  0x10   :  { %214 = shalt.err (!%p211_p7)
}
  0x11   :  { %s266_s22 = smov 128   ;;  %s267_s23 = smov 8  }
  0x12   :  { %22 = dma.hbm_to_vmem [thread:$0]  %s338_s0, 256, %s17_s13, [#allocation3], %s266_s22, %s266_s22, %s267_s23  }
  0x13   :  { %s268_s26 = smov [#allocation5]   ;;  %s215_s30 = scalar_lea.hbm %s339_s1, 512 }
  0x14   :  { %s28_s27 = sshll.u32 %s268_s26, 4  ;;  %p216_p8 = scmp.ne.s32.totalorder %s339_s1, %s215_s30  ;;  %s29_s27 = int_to_ptr.vmem [resolvable:$true] %s28_s27 }
  0x15   :  { %p219_p9 = scmp.lt.u32.totalorder %s215_s30, %s339_s1 }
  0x17   :  { %p221_p10 = pnand %p219_p9, %p216_p8 }
  0x19   :  { %224 = shalt.err (!%p221_p10)
}
  0x1a   :  { %s225_s8 = scalar_lea.vmem %s29_s27, 512  ;;  %p230_p12 = scmp.lt.s32.totalorder %s29_s27, %s29_s27 }
  0x1b   :  { %p226_p11 = scmp.ne.s32.totalorder %s29_s27, %s225_s8  ;;  %p231_p13 = scmp.lt.s32.totalorder %s225_s8, %s225_s8 }
  0x1d   :  { %p232_p0 = por %p231_p13, %p230_p12 }
  0x1f   :  { %p233_p1 = pnand %p232_p0, %p226_p11 }
  0x21   :  { %236 = shalt.err (!%p233_p1)
}
  0x22   :  { %34 = dma.hbm_to_vmem [thread:$0]  %s339_s1, 512, %s29_s27, [#allocation6], %s266_s22, %s266_s22, %s267_s23  }
  0x23   :  { %259 = dma.done.wait [#allocation3], 256  }
  0x24   :  { %260 = vsyncadd [#allocation3], 4294967040 }
  0x25   :  { %261 = dma.done.wait [#allocation6], 512  }
  0x26   :  { %262 = vsyncadd [#allocation6], 4294966784  ;;  %vm56_vm0 = vcmask 261120   ;;  %v45_v0 = vld [vmem:[#allocation5] sm:$0xff]  ;;  %v46_v1 = vld [vmem:[#allocation5 + $0x8] sm:$0xff]  ;;  %s269_s11 = smov [#allocation7]  }
  0x27   :  { %v47_v2 = vld [vmem:[#allocation5 + $0x10] sm:$0xff]  ;;  %v180_v3 = vpack.c.bf16 %v46_v1, %v45_v0  ;;  %v48_v4 = vld [vmem:[#allocation5 + $0x18] sm:$0xff]  ;;  %s147_s12 = sshll.u32 %s269_s11, 4  ;;  %s148_s12 = int_to_ptr.vmem [resolvable:$true] %s147_s12 }
  0x28   :  { %v43_v5 = vld [vmem:[#allocation2] sm:$0xff]  ;;  %v184_v6 = vpack.c.bf16 %v48_v4, %v47_v2  ;;  %v44_v7 = vld [vmem:[#allocation2 + $0x8] sm:$0xff]  ;;  %s237_s13 = scalar_lea.vmem %s148_s12, 256  ;;  %p242_p3 = scmp.lt.s32.totalorder %s148_s12, %s148_s12 }
  0x29   :  { %177 = vmatprep.mubr.msk.f32.mxu0 %vm56_vm0, %v43_v5  ;;  %181 = vmatprep.subr.bf16.mxu0 %v180_v3  ;;  %v160_v8 = vld [vmem:[%s340_s2] ss:$0 sm:$0xff]  ;;  %p238_p2 = scmp.ne.s32.totalorder %s148_s12, %s237_s13  ;;  %p243_p4 = scmp.lt.s32.totalorder %s237_s13, %s237_s13 }
  0x2a   :  { %183 = vmatpush3.bf16.msra.mxu0 %v180_v3 }
  0x2b   :  { %185 = vmatprep.subr.bf16.mxu0 %v184_v6  ;;  %p244_p5 = por %p243_p4, %p242_p3 }
  0x2d   :  { %p245_p6 = pnand %p244_p5, %p238_p2 }
  0x2e   :  { %187 = vmatpush3.bf16.msra.mxu0 %v184_v6 }
  0x31   :  { %178 = vmatmul.mubr.msk.f32.vlgmr.msra.gmra.mrb[0].mxu0 %vm56_vm0, %v44_v7 }
 0x104   :  { %v179_v9 = vpop.f32.mrb[0].mxu0 }
 0x105   :  { %v135_v10 = vadd.f32 %v179_v9, %v160_v8  ;;  %v129_v11 = vpop.f32.mrb[1].mxu0 }
 0x106   :  { %v130_v12 = vadd.f32 %v160_v8, %v129_v11 }
 0x107   :  { %v139_v13 = vmax.f32 %v135_v10, 0.0 }
 0x108   :  { %v138_v14 = vmax.f32 %v130_v12, 0.0 }
 0x109   :  { %141 = vst [vmem:[#allocation7 + $0x8] sm:$0xff] %v139_v13 }
 0x10a   :  { %140 = vst [vmem:[#allocation7] sm:$0xff] %v138_v14 }
 0x10b   :  { %248 = shalt.err (!%p245_p6)
}
 0x10c   :  { %s249_s15 = scalar_lea.hbm %s341_s3, 256 }
 0x10d   :  { %p250_p7 = scmp.ne.s32.totalorder %s341_s3, %s249_s15  ;;  %p253_p8 = scmp.lt.u32.totalorder %s249_s15, %s341_s3 }
 0x10f   :  { %p255_p9 = pnand %p253_p8, %p250_p7 }
 0x111   :  { %258 = shalt.err (!%p255_p9)
}
 0x112   :  { %153 = dma.vmem_to_hbm [thread:$0]  %s148_s12, 256, %s341_s3, [#allocation4], %s266_s22, %s266_s22, %s267_s23  }
 0x113   :  { %263 = dma.done.wait [#allocation4], 256  }
 0x114   :  { %264 = vsyncadd [#allocation4], 4294967040 }
 0x115   :  { %157 = vsyncpa [#allocation3], 1 }
 0x116   :  { %158 = vsyncpa [#allocation6], 1 }
 0x117   :  { %159 = vsyncpa [#allocation4], 1 }

</bundles_post_ra>
